<compile_context>
chip_gen: v7x
topology: tpu7x:2x2x1
jax: 0.10.0
libtpu: 0.0.40
codegen_flags: <defaults>
</compile_context>

<pallas_src>
import functools

import jax
import jax.numpy as jnp
from jax.experimental import pallas as pl
from jax.experimental.pallas import tpu as pltpu

EPS = 1e-5
KS = 3  # 'fadeinstance3x3'


def _stats_kernel(x_ref, stats_ref, sum_acc, ssq_acc, *, inv_hw):
    """Per-(N, C) instance-norm statistics, reduced over row tiles."""
    r = pl.program_id(1)

    @pl.when(r == 0)
    def _():
        sum_acc[...] = jnp.zeros_like(sum_acc)
        ssq_acc[...] = jnp.zeros_like(ssq_acc)

    c = x_ref.shape[-1]
    x = x_ref[0].astype(jnp.float32).reshape(-1, c)            # (tH*W, C)
    sum_acc[...] += jnp.sum(x, axis=0, keepdims=True)
    ssq_acc[...] += jnp.sum(x * x, axis=0, keepdims=True)

    @pl.when(r == pl.num_programs(1) - 1)
    def _():
        mean = sum_acc[...] * inv_hw
        var = ssq_acc[...] * inv_hw - mean * mean              # biased variance
        stats_ref[0, 0:1, :] = mean
        stats_ref[0, 1:2, :] = jax.lax.rsqrt(var + EPS)


def _apply_kernel(x_ref, stats_ref, w_ref, b_ref, fp_hbm, out_ref, fbuf, sem):
    """Normalize one row tile and apply the fused 3x3 gamma/beta conv + epilogue.

    x_ref:    (1, tH, W, C)   f32 row tile of x (NHWC)
    stats_ref:(1, 2, C)       f32 [mean ; rsqrt(var+eps)] for this image
    w_ref:    (9, Cl, 2C)     bf16 fused conv weights, one (Cl, 2C) slab per tap
    b_ref:    (1, 2C)         f32 fused bias [1 + b_gamma, b_beta]
    fp_hbm:   (N, H+2, W+2, Cl) bf16 zero-padded feat, left in HBM (pl.ANY)
    out_ref:  (1, tH, W, C)
    fbuf:     VMEM (tH+2, W+2, Cl) bf16 halo-slab scratch
    sem:      DMA semaphore
    """
    n = pl.program_id(0)
    r = pl.program_id(1)
    _, th, w_dim, c = x_ref.shape
    cl = fbuf.shape[-1]

    # Kick off the DMA of this tile's (tH+2)-row feat halo slab.
    row0 = pl.multiple_of(r * th, th)
    cp = pltpu.make_async_copy(fp_hbm.at[n, pl.ds(row0, th + 2)], fbuf, sem)
    cp.start()

    # Instance norm with precomputed statistics (overlaps the DMA above).
    x = x_ref[0].astype(jnp.float32).reshape(th * w_dim, c)
    mean = stats_ref[0, 0:1, :]
    rstd = stats_ref[0, 1:2, :]
    normalized = (x - mean) * rstd

    cp.wait()
    fp = fbuf[...]                                             # (tH+2, W+2, Cl) bf16

    # Fused gamma/beta conv: 9 shifted windows, one (tH*W, Cl) @ (Cl, 2C) dot each.
    # The bias already carries the "+1", so gb[:, :C] == 1 + gamma, gb[:, C:] == beta.
    gb = jnp.broadcast_to(b_ref[...].astype(jnp.float32), (th * w_dim, 2 * c))
    for tap in range(KS * KS):
        dy, dx = divmod(tap, KS)
        window = fp[dy:dy + th, dx:dx + w_dim, :].reshape(th * w_dim, cl)
        gb = gb + jnp.dot(window, w_ref[tap], preferred_element_type=jnp.float32)

    out = normalized * gb[:, :c] + gb[:, c:]
    out_ref[0] = out.reshape(th, w_dim, c).astype(out_ref.dtype)


def _pick_row_tile(h, w, c, cl, budget_bytes=4 << 20):
    """Largest row tile dividing H whose per-tile working set fits a VMEM budget
    (leaves headroom for Pallas double-buffering; conservative for v7x's 64 MiB)."""
    def tile_bytes(t):
        return (2 * (t * w * c * 4) * 2          # x + out tiles, double-buffered, f32
                + (t + 2) * (w + 2) * cl * 2     # feat halo slab (bf16, single copy)
                + 3 * t * w * c * 4              # normalized + (1+gamma)/beta halves
                + t * w * 2 * c * 4)             # fused conv accumulator
    best = 1
    for t in range(1, h + 1):
        if h % t == 0 and tile_bytes(t) <= budget_bytes:
            best = t
    return best


def fade_forward(x_nchw, feat_nchw, w_gamma, b_gamma, w_beta, b_beta, *, row_tile=None):
    """x_nchw: (N, C, H, W); feat_nchw: (N, Cl, H, W);
    w_*: (C, Cl, 3, 3) conv weights (PyTorch layout); b_*: (C,) biases."""
    N, C, H, W = x_nchw.shape
    Cl = feat_nchw.shape[1]

    tile_h = row_tile if row_tile is not None else _pick_row_tile(H, W, C, Cl)
    assert H % tile_h == 0, "row_tile must divide H"
    n_row = H // tile_h

    # ---- layout glue: NCHW -> NHWC, conv zero-padding, weight/bias fusion ----
    x = jnp.transpose(x_nchw, (0, 2, 3, 1))                          # (N, H, W, C)
    feat = jnp.transpose(feat_nchw, (0, 2, 3, 1)).astype(jnp.bfloat16)
    feat_pad = jnp.pad(feat, ((0, 0), (1, 1), (1, 1), (0, 0)))       # (N, H+2, W+2, Cl)
    # TODO(synk): the NCHW<->NHWC transposes and the spatial pad are extra wrapper
    # HBM round trips; they could be removed by accepting NHWC inputs and zero-filling
    # the halo in-kernel.

    def _tap_matrices(w):  # (C, Cl, 3, 3) -> (9, Cl, C), one (in, out) matrix per tap
        return jnp.transpose(w, (2, 3, 1, 0)).reshape(KS * KS, Cl, C)

    # Fuse gamma/beta along the output-channel axis: one (Cl, 2C) dot per tap.
    w_fused = jnp.concatenate([_tap_matrices(w_gamma), _tap_matrices(w_beta)],
                              axis=-1).astype(jnp.bfloat16)          # (9, Cl, 2C)
    # Fold the "+1" of (1 + gamma) into the gamma bias; keep the bias in f32.
    b_fused = jnp.concatenate([1.0 + b_gamma, b_beta]).reshape(1, 2 * C)
    b_fused = b_fused.astype(jnp.float32)

    # ---- pass 1: per-(N, C) instance-norm statistics (mean, rsqrt(var+eps)) ----
    stats = pl.pallas_call(
        functools.partial(_stats_kernel, inv_hw=1.0 / float(H * W)),
        out_shape=jax.ShapeDtypeStruct((N, 2, C), jnp.float32),
        grid_spec=pltpu.PrefetchScalarGridSpec(
            num_scalar_prefetch=0,
            grid=(N, n_row),
            in_specs=[pl.BlockSpec((1, tile_h, W, C), lambda n, r: (n, r, 0, 0))],
            out_specs=pl.BlockSpec((1, 2, C), lambda n, r: (n, 0, 0)),
            scratch_shapes=[pltpu.VMEM((1, C), jnp.float32),
                            pltpu.VMEM((1, C), jnp.float32)],
        ),
        compiler_params=pltpu.CompilerParams(
            dimension_semantics=("parallel", "arbitrary")),
    )(x)

    # ---- pass 2: normalize + fused gamma/beta conv + FADE epilogue, row tiles ----
    out_nhwc = pl.pallas_call(
        _apply_kernel,
        out_shape=jax.ShapeDtypeStruct((N, H, W, C), x_nchw.dtype),
        grid_spec=pltpu.PrefetchScalarGridSpec(
            num_scalar_prefetch=0,
            grid=(N, n_row),
            in_specs=[
                pl.BlockSpec((1, tile_h, W, C), lambda n, r: (n, r, 0, 0)),
                pl.BlockSpec((1, 2, C), lambda n, r: (n, 0, 0)),
                pl.BlockSpec((KS * KS, Cl, 2 * C), lambda n, r: (0, 0, 0)),
                pl.BlockSpec((1, 2 * C), lambda n, r: (0, 0)),
                pl.BlockSpec(memory_space=pl.ANY),   # padded feat stays in HBM
            ],
            out_specs=pl.BlockSpec((1, tile_h, W, C), lambda n, r: (n, r, 0, 0)),
            scratch_shapes=[
                pltpu.VMEM((tile_h + 2, W + 2, Cl), jnp.bfloat16),
                pltpu.SemaphoreType.DMA,
            ],
        ),
        compiler_params=pltpu.CompilerParams(
            dimension_semantics=("parallel", "parallel"),
            vmem_limit_bytes=32 * 1024 * 1024),
    )(x, stats, w_fused, b_fused, feat_pad)

    return jnp.transpose(out_nhwc, (0, 3, 1, 2))                     # back to NCHW


def _reference_fade(x, feat, wg, bg, wb, bb):
    """Plain-JAX reference for FADE (NCHW); conv operands in bf16 like the kernel."""
    mean = jnp.mean(x, axis=(2, 3), keepdims=True)
    var = jnp.mean((x - mean) ** 2, axis=(2, 3), keepdims=True)
    normalized = (x - mean) / jnp.sqrt(var + EPS)

    def conv(f, w, b):
        y = jax.lax.conv_general_dilated(
            f.astype(jnp.bfloat16), w.astype(jnp.bfloat16),
            window_strides=(1, 1), padding=((1, 1), (1, 1)),
            dimension_numbers=("NCHW", "OIHW", "NCHW"),
            preferred_element_type=jnp.float32)
        return y + b.reshape(1, -1, 1, 1)

    gamma = conv(feat, wg, bg)
    beta = conv(feat, wb, bb)
    return normalized * (1 + gamma) + beta


if __name__ == "__main__":
    key = jax.random.PRNGKey(0)
    N, C_norm, C_label, H, W = 2, 4, 4, 16, 16

    k = jax.random.split(key, 6)
    x = jax.random.normal(k[0], (N, C_norm, H, W), jnp.float32)
    feat = jax.random.normal(k[1], (N, C_label, H, W), jnp.float32)
    # same shapes as nn.Conv2d(label_nc, norm_nc, 3, padding=1)
    w_gamma = 0.1 * jax.random.normal(k[2], (C_norm, C_label, KS, KS), jnp.float32)
    b_gamma = 0.1 * jax.random.normal(k[3], (C_norm,), jnp.float32)
    w_beta = 0.1 * jax.random.normal(k[4], (C_norm, C_label, KS, KS), jnp.float32)
    b_beta = 0.1 * jax.random.normal(k[5], (C_norm,), jnp.float32)

    ref = _reference_fade(x, feat, w_gamma, b_gamma, w_beta, b_beta)

    # Check the default tiling (single row tile at this size) and an explicit
    # 2-row-tile split to exercise the stats reduction + halo DMA paths.
    for rt in (None, 8):
        out = fade_forward(x, feat, w_gamma, b_gamma, w_beta, b_beta, row_tile=rt)
        out = jax.block_until_ready(out)
        assert out.shape == (N, C_norm, H, W)
        err = float(jnp.max(jnp.abs(out - ref)))
        assert jnp.allclose(out, ref, atol=2e-3, rtol=2e-3), \
            f"row_tile={rt}: max abs err {err}"
    print("KERNEL_OK")
</pallas_src>

<mosaic_0001>
module attributes {stable_mosaic.version = 11 : i64} {
  func.func @_stats_kernel(%arg0: i32, %arg1: i32, %arg2: memref<1x16x16x4xf32, #tpu.memory_space<vmem>>, %arg3: memref<1x2x4xf32, #tpu.memory_space<vmem>>, %arg4: memref<1x4xf32, #tpu.memory_space<vmem>>, %arg5: memref<1x4xf32, #tpu.memory_space<vmem>>) attributes {dimension_semantics = [#tpu.dimension_semantics<parallel>, #tpu.dimension_semantics<arbitrary>], iteration_bounds = array<i64: 2, 1>, scalar_prefetch = 0 : i64, scratch_operands = 2 : i64, tpu.core_type = #tpu.core_type<tc>, window_params = [{transform_indices = @transform_0, window_bounds = array<i64: 1, 16, 16, 4>}, {transform_indices = @transform_1, window_bounds = array<i64: 1, 2, 4>}]} {
    %c0_i32 = arith.constant 0 : i32
    %0 = arith.cmpi eq, %arg1, %c0_i32 : i32
    %1 = arith.extui %0 : i1 to i32
    %c0_i32_0 = arith.constant 0 : i32
    %2 = arith.cmpi ne, %1, %c0_i32_0 : i32
    scf.if %2 {
      %cst_15 = arith.constant 0.000000e+00 : f32
      %20 = vector.broadcast %cst_15 : f32 to vector<1x4xf32>
      %c0_16 = arith.constant 0 : index
      %c0_17 = arith.constant 0 : index
      %21 = vector.load %arg4[%c0_16, %c0_17] : memref<1x4xf32, #tpu.memory_space<vmem>>, vector<1x4xf32>
      tpu.vector_store %arg4[%c0_16, %c0_17], %20 {strides = array<i32>} : memref<1x4xf32, #tpu.memory_space<vmem>>, vector<1x4xf32>,
      %cst_18 = arith.constant 0.000000e+00 : f32
      %22 = vector.broadcast %cst_18 : f32 to vector<1x4xf32>
      %c0_19 = arith.constant 0 : index
      %c0_20 = arith.constant 0 : index
      %23 = vector.load %arg5[%c0_19, %c0_20] : memref<1x4xf32, #tpu.memory_space<vmem>>, vector<1x4xf32>
      tpu.vector_store %arg5[%c0_19, %c0_20], %22 {strides = array<i32>} : memref<1x4xf32, #tpu.memory_space<vmem>>, vector<1x4xf32>,
    } else {
    }
    %c0 = arith.constant 0 : index
    %c0_1 = arith.constant 0 : index
    %c0_2 = arith.constant 0 : index
    %c0_3 = arith.constant 0 : index
    %3 = vector.load %arg2[%c0, %c0_1, %c0_2, %c0_3] : memref<1x16x16x4xf32, #tpu.memory_space<vmem>>, vector<1x16x16x4xf32>
    %4 = vector.shape_cast %3 : vector<1x16x16x4xf32> to vector<16x16x4xf32>
    %5 = vector.shape_cast %4 : vector<16x16x4xf32> to vector<256x4xf32>
    %c0_4 = arith.constant 0 : index
    %c0_5 = arith.constant 0 : index
    %6 = vector.load %arg4[%c0_4, %c0_5] : memref<1x4xf32, #tpu.memory_space<vmem>>, vector<1x4xf32>
    %cst = arith.constant dense<0.000000e+00> : vector<4xf32>
    %7 = vector.multi_reduction <add>, %5, %cst [0] : vector<256x4xf32> to vector<4xf32>
    %8 = vector.shape_cast %7 : vector<4xf32> to vector<1x4xf32>
    %9 = arith.addf %6, %8 : vector<1x4xf32>
    %c0_6 = arith.constant 0 : index
    %c0_7 = arith.constant 0 : index
    %10 = vector.load %arg4[%c0_6, %c0_7] : memref<1x4xf32, #tpu.memory_space<vmem>>, vector<1x4xf32>
    tpu.vector_store %arg4[%c0_6, %c0_7], %9 {strides = array<i32>} : memref<1x4xf32, #tpu.memory_space<vmem>>, vector<1x4xf32>,
    %c0_8 = arith.constant 0 : index
    %c0_9 = arith.constant 0 : index
    %11 = vector.load %arg5[%c0_8, %c0_9] : memref<1x4xf32, #tpu.memory_space<vmem>>, vector<1x4xf32>
    %12 = arith.mulf %5, %5 : vector<256x4xf32>
    %cst_10 = arith.constant dense<0.000000e+00> : vector<4xf32>
    %13 = vector.multi_reduction <add>, %12, %cst_10 [0] : vector<256x4xf32> to vector<4xf32>
    %14 = vector.shape_cast %13 : vector<4xf32> to vector<1x4xf32>
    %15 = arith.addf %11, %14 : vector<1x4xf32>
    %c0_11 = arith.constant 0 : index
    %c0_12 = arith.constant 0 : index
    %16 = vector.load %arg5[%c0_11, %c0_12] : memref<1x4xf32, #tpu.memory_space<vmem>>, vector<1x4xf32>
    tpu.vector_store %arg5[%c0_11, %c0_12], %15 {strides = array<i32>} : memref<1x4xf32, #tpu.memory_space<vmem>>, vector<1x4xf32>,
    %c0_i32_13 = arith.constant 0 : i32
    %17 = arith.cmpi eq, %arg1, %c0_i32_13 : i32
    %18 = arith.extui %17 : i1 to i32
    %c0_i32_14 = arith.constant 0 : i32
    %19 = arith.cmpi ne, %18, %c0_i32_14 : i32
    scf.if %19 {
      %c0_15 = arith.constant 0 : index
      %c0_16 = arith.constant 0 : index
      %20 = vector.load %arg4[%c0_15, %c0_16] : memref<1x4xf32, #tpu.memory_space<vmem>>, vector<1x4xf32>
      %cst_17 = arith.constant 3.906250e-03 : f32
      %21 = vector.broadcast %cst_17 : f32 to vector<1x4xf32>
      %22 = arith.mulf %20, %21 : vector<1x4xf32>
      %c0_18 = arith.constant 0 : index
      %c0_19 = arith.constant 0 : index
      %23 = vector.load %arg5[%c0_18, %c0_19] : memref<1x4xf32, #tpu.memory_space<vmem>>, vector<1x4xf32>
      %cst_20 = arith.constant 3.906250e-03 : f32
      %24 = vector.broadcast %cst_20 : f32 to vector<1x4xf32>
      %25 = arith.mulf %23, %24 : vector<1x4xf32>
      %26 = arith.mulf %22, %22 : vector<1x4xf32>
      %27 = arith.subf %25, %26 : vector<1x4xf32>
      %c0_21 = arith.constant 0 : index
      %c0_22 = arith.constant 0 : index
      %c0_23 = arith.constant 0 : index
      %28 = vector.load %arg3[%c0_21, %c0_22, %c0_23] : memref<1x2x4xf32, #tpu.memory_space<vmem>>, vector<1x1x4xf32>
      %29 = vector.shape_cast %28 : vector<1x1x4xf32> to vector<1x4xf32>
      %30 = vector.shape_cast %22 : vector<1x4xf32> to vector<1x1x4xf32>
      tpu.vector_store %arg3[%c0_21, %c0_22, %c0_23], %30 {strides = array<i32>} : memref<1x2x4xf32, #tpu.memory_space<vmem>>, vector<1x1x4xf32>,
      %cst_24 = arith.constant 9.99999974E-6 : f32
      %31 = vector.broadcast %cst_24 : f32 to vector<1x4xf32>
      %32 = arith.addf %27, %31 : vector<1x4xf32>
      %33 = math.rsqrt %32 : vector<1x4xf32>
      %c0_25 = arith.constant 0 : index
      %c1 = arith.constant 1 : index
      %c0_26 = arith.constant 0 : index
      %34 = vector.load %arg3[%c0_25, %c1, %c0_26] : memref<1x2x4xf32, #tpu.memory_space<vmem>>, vector<1x1x4xf32>
      %35 = vector.shape_cast %34 : vector<1x1x4xf32> to vector<1x4xf32>
      %36 = vector.shape_cast %33 : vector<1x4xf32> to vector<1x1x4xf32>
      tpu.vector_store %arg3[%c0_25, %c1, %c0_26], %36 {strides = array<i32>} : memref<1x2x4xf32, #tpu.memory_space<vmem>>, vector<1x1x4xf32>,
    } else {
    }
    return
  }
  func.func @transform_0(%arg0: i32, %arg1: i32) -> (i32, i32, i32, i32) {
    %c0_i32 = arith.constant 0 : i32
    %c0_i32_0 = arith.constant 0 : i32
    %c0_i32_1 = arith.constant 0 : i32
    return %arg0, %arg1, %c0_i32, %c0_i32_0 : i32, i32, i32, i32
  }
  func.func @transform_1(%arg0: i32, %arg1: i32) -> (i32, i32, i32) {
    %c0_i32 = arith.constant 0 : i32
    %c0_i32_0 = arith.constant 0 : i32
    %c0_i32_1 = arith.constant 0 : i32
    return %arg0, %c0_i32, %c0_i32_0 : i32, i32, i32
  }
}

</mosaic_0001>

<bundles_post_ra>
// kernel: tpu_custom_call.1
= control target key start
LH: loop header
LB: loop body
LE: loop exit
PB: predicated region body
PF: predicated region fallthrough
CT: control target
= control target key end

     0   :  { %6 = vsyncpa [#allocation5], 0  ;;  %s845_s0 = inlined_call_operand.vmem [shape: f32[2,16,16,4], index: 0, kind: input, shape index: {}]   ;;  %s846_s1 = inlined_call_operand.hbm [shape: f32[2,2,4], index: 1, kind: output, shape index: {}]  }
   0x1   :  { %8 = vsyncpa [#allocation5 + $0x1], 0  ;;  %s629_s6 = smov 0   ;;  %s631_s7 = smov 0  }
   0x2   :  { %s633_s8 = smov 0   ;;  %s635_s9 = smov 0  }
   0x3   :  { %s637_s10 = smov 0   ;;  %s639_s11 = smov 0  }
   0x4 LB: > { %s466_s12 = sadd.s32 4294967295, %s615_s11   ;;  %s467_s13 = sadd.s32 4294967294, %s615_s11   ;;  %s615_s11 = sphi %s639_s11, %s14_s11   ;;  %s611_s10 = sphi %s637_s10, %s853_s10   ;;  %s607_s9 = sphi %s635_s9, %s852_s9   ;;  %s603_s8 = sphi %s633_s8, %s851_s8   ;;  %s599_s7 = sphi %s631_s7, %s850_s7   ;;  %s595_s6 = sphi %s629_s6, %s849_s6  }
   0x5   : > { %s26_s14 = sadd.s32 1, %s611_s10  ;;  %s61_s15 = sadd.s32 1, %s603_s8 }
   0x6   : > { %p28_p0 = scmp.ge.s32.totalorder %s26_s14, 2  ;;  %p71_p1 = scmp.ne.s32.totalorder %s603_s8, %s599_s7 }
   0x7   : > { %p72_p2 = scmp.eq.s32.totalorder %s466_s12, 1  ;;  %p77_p3 = scmp.ne.s32.totalorder %s599_s7, %s595_s6 }
   0x8   : > { %s855_s14 = smov (%p28_p0, %s26_s14), 0  ;;  %p78_p5 = scmp.eq.s32.totalorder %s467_s13, 1 }
   0x9   : > { %p669_p4 = por %p72_p2, %p71_p1  ;;  %s58_s17 = ssub.s32 %s611_s10, %s855_s14 }
   0xa   : > { %p470_p6 = scmp.ge.s32.totalorder %s615_s11, 1  ;;  %p59_p7 = scmp.eq.s32.totalorder %s58_s17, 0 }
   0xb   : > { %p676_p8 = por %p78_p5, %p77_p3  ;;  %p110_p9 = scmp.lt.s32.totalorder %s615_s11, 3 }
   0xc   : > { %s682_s19 = scalar_select %p59_p7, %s603_s8, %s61_s15  }
   0xd   : > { %p111_p10 = pnand %p470_p6, %p110_p9 }
   0xe   : > { %vm150_vm0 = vcmask (!%p111_p10), 24576   ;;  %p136_p11 = scmp.lt.s32.totalorder (!%p111_p10), %s607_s9, 1  ;;  %v617_v0 = vmov (!%p111_p10), 0.0   ;;  %vm186_vm1 = vcmask (!%p111_p10), 31744   ;;  %s132_s25 = sand.u32 (!%p111_p10), 1, %s599_s7  }
   0xf   : > { %114 = sbr.rel (%p111_p10) target bundleno = 148 (0x94), region = 24  ;;  %151 = vst.msk [vmem:[#allocation2] sm:$0x1] (!%p111_p10), %vm150_vm0, %v617_v0  ;;  %152 = vst.msk [vmem:[#allocation3] sm:$0x1] (!%p111_p10), %vm150_vm0, %v617_v0  ;;  %s471_s26 = sshll.u32 (!%p111_p10), %s132_s25, 1 }
  0x10   : > { %s134_s27 = scalar_lea.vmem (!%p111_p10), [#allocation4], %s471_s26  ;;  %s475_s29 = sshll.u32 (!%p111_p10), %s607_s9, 5 }
  0x11   : > { %s390_s28 = sshll.u32 (!%p111_p10), %s134_s27, 4  ;;  %s799_s3 = scalar_lea.hbm (!%p111_p10), %s846_s1, %s475_s29  ;;  %s794_s28 = int_to_ptr.vmem [resolvable:$true] %s390_s28 }
  0x12   : > { %s377_s4 = scalar_lea.sflag (!%p111_p10), [#allocation5], %s132_s25  ;;  %s537_s5 = scalar_lea.vmem (!%p111_p10), %s794_s28, 32 }
  0x13   : > { %p538_p12 = scmp.ne.s32.totalorder (!%p111_p10), %s794_s28, %s537_s5 }
  0x15   : > { %p539_p13 = pnand (!%p111_p10), %p538_p12, %p669_p4 }
  0x16   : > { %s137_s20 = scalar_select %p136_p11, %s607_s9, 1 }
  0x17   : > { %p540_p0 = pneg %p539_p13  ;;  %s618_s9 = smov [#allocation4]  }
  0x18   : > { %s478_s21 = sshll.u32 %s137_s20, 8  ;;  %s541_s12 = sshll.u32 %s618_s9, 4  ;;  %s542_s12 = int_to_ptr.vmem [resolvable:$false] %s541_s12 }
  0x19   : > { %s691_s24 = scalar_lea.vmem %s845_s0, %s478_s21  ;;  %s543_s13 = scalar_lea.vmem %s542_s12, 64 }
  0x1a   : > { %v153_v1 = vld [vmem:[%s691_s24] sm:$0xff]  ;;  %v154_v2 = vld [vmem:[%s691_s24 + $0x8] sm:$0xff]  ;;  %v155_v3 = vld [vmem:[%s691_s24 + $0x10] sm:$0xff]  ;;  %p544_p1 = scmp.lt.s32.totalorder %s794_s28, %s542_s12  ;;  %p545_p2 = scmp.lt.s32.totalorder %s543_s13, %s537_s5 }
  0x1b   : > { %v156_v4 = vld [vmem:[%s691_s24 + $0x18] sm:$0xff]  ;;  %v187_v5 = vsel %vm186_vm1, %v153_v1, 0.0  ;;  %v188_v6 = vsel %vm186_vm1, %v154_v2, 0.0  ;;  %v190_v7 = vsel %vm186_vm1, %v155_v3, 0.0  ;;  %v157_v8 = vld [vmem:[%s691_s24 + $0x20] sm:$0xff]  ;;  %v158_v11 = vld [vmem:[%s691_s24 + $0x28] sm:$0xff]  ;;  %v260_v30 = vmul.f32 %v153_v1, %v153_v1 }
  0x1c   : > { %v189_v9 = vadd.f32 %v188_v6, %v187_v5  ;;  %v192_v10 = vsel %vm186_vm1, %v156_v4, 0.0  ;;  %v194_v13 = vsel %vm186_vm1, %v157_v8, 0.0  ;;  %v159_v14 = vld [vmem:[%s691_s24 + $0x30] sm:$0xff]  ;;  %v196_v16 = vsel %vm186_vm1, %v158_v11, 0.0  ;;  %v160_v17 = vld [vmem:[%s691_s24 + $0x38] sm:$0xff]  ;;  %v161_v20 = vld [vmem:[%s691_s24 + $0x40] sm:$0xff]  ;;  %p546_p3 = por %p545_p2, %p544_p1 }
  0x1d   : > { %v198_v19 = vsel %vm186_vm1, %v159_v14, 0.0  ;;  %v200_v22 = vsel %vm186_vm1, %v160_v17, 0.0  ;;  %v162_v23 = vld [vmem:[%s691_s24 + $0x48] sm:$0xff]  ;;  %v202_v25 = vsel %vm186_vm1, %v161_v20, 0.0  ;;  %v163_v26 = vld [vmem:[%s691_s24 + $0x50] sm:$0xff]  ;;  %v164_v28 = vld [vmem:[%s691_s24 + $0x58] sm:$0xff]  ;;  %v261_v31 = vmul.f32 %v154_v2, %v154_v2 }
  0x1e   : > { %v191_v12 = vadd.f32 %v190_v7, %v189_v9  ;;  %v204_v29 = vsel %vm186_vm1, %v162_v23, 0.0  ;;  %v262_v32 = vmul.f32 %v155_v3, %v155_v3  ;;  %v206_v34 = vsel %vm186_vm1, %v163_v26, 0.0  ;;  %v165_v36 = vld [vmem:[%s691_s24 + $0x60] sm:$0xff]  ;;  %v166_v43 = vld [vmem:[%s691_s24 + $0x68] sm:$0xff]  ;;  %v167_v49 = vld [vmem:[%s691_s24 + $0x70] sm:$0xff]  ;;  %p547_p5 = pnand %p546_p3, %p540_p0 }
  0x1f   : > { %v263_v35 = vmul.f32 %v156_v4, %v156_v4  ;;  %v208_v38 = vsel %vm186_vm1, %v164_v28, 0.0  ;;  %v264_v39 = vmul.f32 %v157_v8, %v157_v8  ;;  %v292_v40 = vsel %vm186_vm1, %v260_v30, 0.0  ;;  %v168_v55 = vld [vmem:[%s691_s24 + $0x78] sm:$0xff]  ;;  %v169_v61 = vld [vmem:[%s691_s24 + $0x80] sm:$0xff]  ;;  %v170_v3 = vld [vmem:[%s691_s24 + $0x88] sm:$0xff] }
  0x20   : > { %v193_v15 = vadd.f32 %v192_v10, %v191_v12  ;;  %v293_v41 = vsel %vm186_vm1, %v261_v31, 0.0  ;;  %v295_v42 = vsel %vm186_vm1, %v262_v32, 0.0  ;;  %v210_v46 = vsel %vm186_vm1, %v165_v36, 0.0  ;;  %v171_v9 = vld [vmem:[%s691_s24 + $0x90] sm:$0xff] }
  0x21   : > { %v294_v45 = vadd.f32 %v293_v41, %v292_v40  ;;  %v265_v47 = vmul.f32 %v158_v11, %v158_v11  ;;  %v297_v48 = vsel %vm186_vm1, %v263_v35, 0.0  ;;  %v212_v52 = vsel %vm186_vm1, %v166_v43, 0.0 }
  0x22   : > { %v195_v18 = vadd.f32 %v194_v13, %v193_v15  ;;  %v266_v53 = vmul.f32 %v159_v14, %v159_v14  ;;  %v299_v54 = vsel %vm186_vm1, %v264_v39, 0.0  ;;  %v214_v58 = vsel %vm186_vm1, %v167_v49, 0.0  ;;  %v172_v15 = vld [vmem:[%s691_s24 + $0x98] sm:$0xff] }
  0x23   : > { %v296_v51 = vadd.f32 %v295_v42, %v294_v45  ;;  %v267_v59 = vmul.f32 %v160_v17, %v160_v17  ;;  %v301_v60 = vsel %vm186_vm1, %v265_v47, 0.0  ;;  %v216_v0 = vsel %vm186_vm1, %v168_v55, 0.0  ;;  %v176_v39 = vld [vmem:[%s691_s24 + $0xb8] sm:$0xff]  ;;  %v177_v45 = vld [vmem:[%s691_s24 + $0xc0] sm:$0xff] }
  0x24   : > { %v197_v21 = vadd.f32 %v196_v16, %v195_v18  ;;  %v268_v1 = vmul.f32 %v161_v20, %v161_v20  ;;  %v303_v2 = vsel %vm186_vm1, %v266_v53, 0.0  ;;  %v218_v6 = vsel %vm186_vm1, %v169_v61, 0.0 }
  0x25   : > { %v298_v57 = vadd.f32 %v297_v48, %v296_v51  ;;  %v269_v7 = vmul.f32 %v162_v23, %v162_v23  ;;  %v305_v8 = vsel %vm186_vm1, %v267_v59, 0.0  ;;  %v220_v12 = vsel %vm186_vm1, %v170_v3, 0.0  ;;  %v178_v51 = vld [vmem:[%s691_s24 + $0xc8] sm:$0xff] }
  0x26   : > { %v199_v24 = vadd.f32 %v198_v19, %v197_v21  ;;  %v270_v13 = vmul.f32 %v163_v26, %v163_v26  ;;  %v307_v14 = vsel %vm186_vm1, %v268_v1, 0.0  ;;  %v222_v18 = vsel %vm186_vm1, %v171_v9, 0.0  ;;  %v173_v21 = vld [vmem:[%s691_s24 + $0xa0] sm:$0xff] }
  0x27   : > { %v300_v63 = vadd.f32 %v299_v54, %v298_v57  ;;  %v271_v19 = vmul.f32 %v164_v28, %v164_v28  ;;  %v309_v20 = vsel %vm186_vm1, %v269_v7, 0.0  ;;  %v226_v31 = vsel %vm186_vm1, %v173_v21, 0.0  ;;  %v179_v57 = vld [vmem:[%s691_s24 + $0xd0] sm:$0xff] }
  0x28   : > { %v201_v27 = vadd.f32 %v200_v22, %v199_v24  ;;  %v224_v24 = vsel %vm186_vm1, %v172_v15, 0.0  ;;  %v311_v26 = vsel %vm186_vm1, %v270_v13, 0.0  ;;  %v273_v32 = vmul.f32 %v166_v43, %v166_v43 }
  0x29   : > { %v302_v5 = vadd.f32 %v301_v60, %v300_v63  ;;  %v313_v28 = vsel %vm186_vm1, %v271_v19, 0.0  ;;  %v232_v48 = vsel %vm186_vm1, %v176_v39, 0.0  ;;  %v234_v54 = vsel %vm186_vm1, %v177_v45, 0.0  ;;  %v180_v63 = vld [vmem:[%s691_s24 + $0xd8] sm:$0xff] }
  0x2a   : > { %v203_v33 = vadd.f32 %v202_v25, %v201_v27  ;;  %v272_v25 = vmul.f32 %v165_v36, %v165_v36  ;;  %v174_v27 = vld [vmem:[%s691_s24 + $0xa8] sm:$0xff]  ;;  %v317_v43 = vsel %vm186_vm1, %v273_v32, 0.0  ;;  %v236_v60 = vsel %vm186_vm1, %v178_v51, 0.0 }
  0x2b   : > { %v304_v11 = vadd.f32 %v303_v2, %v302_v5  ;;  %v238_v2 = vsel %vm186_vm1, %v179_v57, 0.0  ;;  %v181_v5 = vld [vmem:[%s691_s24 + $0xe0] sm:$0xff] }
  0x2c   : > { %v205_v37 = vadd.f32 %v204_v29, %v203_v33  ;;  %v175_v33 = vld [vmem:[%s691_s24 + $0xb0] sm:$0xff]  ;;  %v315_v36 = vsel %vm186_vm1, %v272_v25, 0.0 }
  0x2d   : > { %v306_v17 = vadd.f32 %v305_v8, %v304_v11  ;;  %v230_v42 = vsel %vm186_vm1, %v175_v33, 0.0  ;;  %v240_v8 = vsel %vm186_vm1, %v180_v63, 0.0  ;;  %v182_v11 = vld [vmem:[%s691_s24 + $0xe8] sm:$0xff] }
  0x2e   : > { %v207_v44 = vadd.f32 %v206_v34, %v205_v37  ;;  %v228_v37 = vsel %vm186_vm1, %v174_v27, 0.0 }
  0x2f   : > { %v308_v23 = vadd.f32 %v307_v14, %v306_v17  ;;  %v242_v14 = vsel %vm186_vm1, %v181_v5, 0.0 }
  0x30   : > { %v209_v50 = vadd.f32 %v208_v38, %v207_v44  ;;  %v274_v38 = vmul.f32 %v167_v49, %v167_v49  ;;  %v275_v44 = vmul.f32 %v168_v55, %v168_v55 }
  0x31   : > { %v310_v30 = vadd.f32 %v309_v20, %v308_v23  ;;  %v244_v20 = vsel %vm186_vm1, %v182_v11, 0.0 }
  0x32   : > { %v211_v56 = vadd.f32 %v210_v46, %v209_v50  ;;  %v276_v50 = vmul.f32 %v169_v61, %v169_v61  ;;  %v319_v49 = vsel %vm186_vm1, %v274_v38, 0.0  ;;  %v321_v55 = vsel %vm186_vm1, %v275_v44, 0.0 }
  0x33   : > { %v312_v35 = vadd.f32 %v311_v26, %v310_v30 }
  0x34   : > { %v213_v62 = vadd.f32 %v212_v52, %v211_v56  ;;  %v277_v56 = vmul.f32 %v170_v3, %v170_v3  ;;  %v323_v61 = vsel %vm186_vm1, %v276_v50, 0.0 }
  0x35   : > { %v314_v41 = vadd.f32 %v313_v28, %v312_v35  ;;  %v284_v28 = vmul.f32 %v177_v45, %v177_v45  ;;  %v288_v45 = vmul.f32 %v181_v5, %v181_v5 }
  0x36   : > { %v215_v4 = vadd.f32 %v214_v58, %v213_v62  ;;  %v278_v62 = vmul.f32 %v171_v9, %v171_v9  ;;  %v325_v3 = vsel %vm186_vm1, %v277_v56, 0.0 }
  0x37   : > { %v316_v47 = vadd.f32 %v315_v36, %v314_v41  ;;  %v286_v41 = vmul.f32 %v179_v57, %v179_v57  ;;  %v347_v57 = vsel %vm186_vm1, %v288_v45, 0.0 }
  0x38   : > { %v217_v10 = vadd.f32 %v216_v0, %v215_v4  ;;  %v279_v4 = vmul.f32 %v172_v15, %v172_v15  ;;  %v327_v9 = vsel %vm186_vm1, %v278_v62, 0.0  ;;  %v183_v15 = vld [vmem:[%s691_s24 + $0xf0] sm:$0xff] }
  0x39   : > { %v318_v53 = vadd.f32 %v317_v43, %v316_v47  ;;  %v246_v26 = vsel %vm186_vm1, %v183_v15, 0.0  ;;  %v287_v43 = vmul.f32 %v180_v63, %v180_v63  ;;  %v343_v50 = vsel %vm186_vm1, %v286_v41, 0.0 }
  0x3a   : > { %v219_v16 = vadd.f32 %v218_v6, %v217_v10  ;;  %v280_v10 = vmul.f32 %v173_v21, %v173_v21  ;;  %v329_v17 = vsel %vm186_vm1, %v279_v4, 0.0 }
  0x3b   : > { %v320_v59 = vadd.f32 %v319_v49, %v318_v53  ;;  %v345_v53 = vsel %vm186_vm1, %v287_v43, 0.0 }
  0x3c   : > { %v221_v22 = vadd.f32 %v220_v12, %v219_v16  ;;  %v281_v16 = vmul.f32 %v174_v27, %v174_v27  ;;  %v331_v23 = vsel %vm186_vm1, %v280_v10, 0.0 }
  0x3d   : > { %v322_v1 = vadd.f32 %v321_v55, %v320_v59  ;;  %v290_v55 = vmul.f32 %v183_v15, %v183_v15 }
  0x3e   : > { %v223_v29 = vadd.f32 %v222_v18, %v221_v22  ;;  %v282_v22 = vmul.f32 %v175_v33, %v175_v33  ;;  %v333_v30 = vsel %vm186_vm1, %v281_v16, 0.0  ;;  %v285_v33 = vmul.f32 %v178_v51, %v178_v51 }
  0x3f   : > { %v324_v7 = vadd.f32 %v323_v61, %v322_v1  ;;  %v289_v51 = vmul.f32 %v182_v11, %v182_v11  ;;  %v351_v1 = vsel %vm186_vm1, %v290_v55, 0.0 }
  0x40   : > { %v225_v34 = vadd.f32 %v224_v24, %v223_v29  ;;  %v184_v24 = vld [vmem:[%s691_s24 + $0xf8] sm:$0xff]  ;;  %v283_v29 = vmul.f32 %v176_v39, %v176_v39 }
  0x41   : > { %v326_v13 = vadd.f32 %v325_v3, %v324_v7  ;;  %v248_v32 = vsel %vm186_vm1, %v184_v24, 0.0  ;;  %v291_v62 = vmul.f32 %v184_v24, %v184_v24  ;;  %v349_v61 = vsel %vm186_vm1, %v289_v51, 0.0 }
  0x42   : > { %v227_v40 = vadd.f32 %v226_v31, %v225_v34  ;;  %v335_v34 = vsel %vm186_vm1, %v282_v22, 0.0  ;;  %v337_v38 = vsel %vm186_vm1, %v283_v29, 0.0 }
  0x43   : > { %v328_v19 = vadd.f32 %v327_v9, %v326_v13  ;;  %v353_v3 = vsel %vm186_vm1, %v291_v62, 0.0 }
  0x44   : > { %v229_v46 = vadd.f32 %v228_v37, %v227_v40 }
  0x45   : > { %v330_v25 = vadd.f32 %v329_v17, %v328_v19 }
  0x46   : > { %v231_v52 = vadd.f32 %v230_v42, %v229_v46  ;;  %v339_v42 = vsel %vm186_vm1, %v284_v28, 0.0  ;;  %v341_v46 = vsel %vm186_vm1, %v285_v33, 0.0 }
  0x47   : > { %v332_v27 = vadd.f32 %v331_v23, %v330_v25 }
  0x48   : > { %v233_v58 = vadd.f32 %v232_v48, %v231_v52 }
  0x49   : > { %v334_v37 = vadd.f32 %v333_v30, %v332_v27 }
  0x4a   : > { %v235_v0 = vadd.f32 %v234_v54, %v233_v58 }
  0x4b   : > { %v336_v40 = vadd.f32 %v335_v34, %v334_v37 }
  0x4c   : > { %v237_v6 = vadd.f32 %v236_v60, %v235_v0  ;;  %v185_v60 = vld [vmem:[#allocation2] sm:$0x1] }
  0x4d   : > { %v338_v44 = vadd.f32 %v337_v38, %v336_v40 }
  0x4e   : > { %v239_v12 = vadd.f32 %v238_v2, %v237_v6 }
  0x4f   : > { %v340_v48 = vadd.f32 %v339_v42, %v338_v44 }
  0x50   : > { %v241_v18 = vadd.f32 %v240_v8, %v239_v12 }
  0x51   : > { %v342_v52 = vadd.f32 %v341_v46, %v340_v48 }
  0x52   : > { %v243_v21 = vadd.f32 %v242_v14, %v241_v18  ;;  %v259_v14 = vld [vmem:[#allocation3] sm:$0x1] }
  0x53   : > { %v344_v56 = vadd.f32 %v343_v50, %v342_v52 }
  0x54   : > { %v245_v31 = vadd.f32 %v244_v20, %v243_v21 }
  0x55   : > { %v346_v59 = vadd.f32 %v345_v53, %v344_v56 }
  0x56   : > { %v247_v35 = vadd.f32 %v246_v26, %v245_v31 }
  0x57   : > { %v348_v0 = vadd.f32 %v347_v57, %v346_v59 }
  0x58   : > { %v249_v36 = vadd.f32 %v248_v32, %v247_v35 }
  0x59   : > { %v350_v4 = vadd.f32 %v349_v61, %v348_v0 }
  0x5a   : > { %v250_v39 = vrot.slane %v249_v36, 4 }
  0x5b   : > { %v352_v5 = vadd.f32 %v351_v1, %v350_v4 }
  0x5c   : > { %v251_v47 = vadd.f32 %v250_v39, %v249_v36 }
  0x5d   : > { %v354_v6 = vadd.f32 %v353_v3, %v352_v5 }
  0x5e   : > { %v252_v49 = vrot.slane %v251_v47, 2 }
  0x5f   : > { %v355_v7 = vrot.slane %v354_v6, 4 }
  0x60   : > { %v253_v54 = vadd.f32 %v252_v49, %v251_v47 }
  0x61   : > { %v356_v8 = vadd.f32 %v355_v7, %v354_v6 }
  0x62   : > { %v254_v58 = vrot.slane %v253_v54, 1 }
  0x63   : > { %v357_v9 = vrot.slane %v356_v8, 2 }
  0x64   : > { %v255_v63 = vadd.f32 %v254_v58, %v253_v54 }
  0x65   : > { %v358_v12 = vadd.f32 %v357_v9, %v356_v8 }
  0x66   : > { %v256_v2 = vadd.f32 %v255_v63, %v185_v60 }
  0x67   : > { %v359_v13 = vrot.slane %v358_v12, 1 }
  0x68   : > { %258 = vst.msk [vmem:[#allocation2] sm:$0x1] %vm150_vm0, %v256_v2 }
  0x69   : > { %v360_v16 = vadd.f32 %v359_v13, %v358_v12 }
  0x6b   : > { %v361_v17 = vadd.f32 %v360_v16, %v259_v14 }
  0x6d   : > { %362 = vst.msk [vmem:[#allocation3] sm:$0x1] %vm150_vm0, %v361_v17 }
  0x6f   : > { %v366_v10 = vld [vmem:[#allocation2] sm:$0x1] }
  0x70   : > { %v367_v11 = vmul.f32 0.00390625, %v366_v10 }
  0x72   : > { %372 = vst.msk [vmem:[%s134_s27] sm:$0x1] %vm150_vm0, %v367_v11  ;;  %v370_v15 = vmul.f32 %v367_v11, %v367_v11 }
  0x74   : > { %v368_v18 = vld [vmem:[#allocation3] sm:$0x1] }
  0x75   : > { %v369_v19 = vmul.f32 0.00390625, %v368_v18 }
  0x77   : > { %v371_v20 = vsub.f32 %v369_v19, %v370_v15 }
  0x79   : > { %v373_v22 = vadd.f32 1e-05, %v371_v20 }
  0x7b   : > { %535 = vrsqrt.f32 %v373_v22 }
  0x85   : > { %v536_v23 = vpop.eup %535 }
  0x86   : > { %375 = vst.msk [vmem:[%s134_s27 + $0x1] sm:$0x1] %vm150_vm0, %v536_v23 }
  0x87   : > { %550 = shalt.err (!%p547_p5)
}
  0x88   : > { %s551_s15 = scalar_lea.hbm %s799_s3, 32  ;;  %s555_s21 = scalar_lea.hbm %s846_s1, 64 }
  0x89   : > { %p552_p6 = scmp.ne.s32.totalorder %s799_s3, %s551_s15  ;;  %p556_p10 = scmp.lt.u32.totalorder %s799_s3, %s846_s1 }
  0x8a   : > { %p557_p11 = scmp.lt.u32.totalorder %s555_s21, %s551_s15  ;;  %p559_p13 = scmp.lt.u32.totalorder %s551_s15, %s799_s3 }
  0x8b   : > { %p553_p7 = pnand %p552_p6, %p669_p4 }
  0x8c   : > { %p558_p12 = por %p557_p11, %p556_p10 }
  0x8d   : > { %p554_p9 = pneg %p553_p7 }
  0x8e   : > { %p560_p0 = por %p559_p13, %p558_p12 }
  0x90   : > { %p561_p1 = pnand %p560_p0, %p554_p9 }
  0x92   : > { %564 = shalt.err (!%p561_p1)
}
  0x93   : > { %479 = dma.vmem_to_hbm [thread:$0]  (%p669_p4), %s794_s28, 32, %s799_s3, %s377_s4  }
  0x94 PF: > { %p485_p2 = scmp.ge.s32.totalorder %s615_s11, 2  ;;  %s402_s24 = sand.u32 1, %s595_s6  }
  0x95   : > { %s403_s25 = scalar_lea.sflag [#allocation5], %s402_s24 }
  0x96   : > { %p482_p3 = pnand %p485_p2, %p676_p8 }
  0x98   : > { %590 = dma.done.wait (!%p482_p3), %s403_s25, 32  }
  0x99   : > { %592 = vsyncadd (!%p482_p3), %s403_s25, 4294967264  ;;  %s14_s11 = sadd.s32 1, %s615_s11   ;;  %s849_s6 = smov %s599_s7 }
  0x9a   : > { %p11_p5 = scmp.ge.s32.totalorder %s14_s11, 4   ;;  %s850_s7 = smov %s603_s8 }
  0x9b   : > { %s851_s8 = smov %s682_s19  ;;  %s852_s9 = smov %s611_s10 }
  0x9c   : > { %s853_s10 = smov %s855_s14  ;;  %13 = sbr.rel (!%p11_p5) target bundleno = 4 (0x4), region = 67 }
  0xa3   :  { %408 = vsyncpa [#allocation5], 1 }
  0xa4   :  { %410 = vsyncpa [#allocation5 + $0x1], 1 }

</bundles_post_ra>
